<compile_context>
chip_gen: v6e
topology: v6e:2x2x1
jax: 0.10.0
libtpu: 0.0.40
codegen_flags: <defaults>
</compile_context>

<pallas_src>
import jax
import jax.numpy as jnp
from jax.experimental import pallas as pl
from jax.experimental.pallas import tpu as pltpu

IN_FEATURES = 28 * 28          # 784 (contraction dim, deliberately not padded)
H1_PAD = 128                   # 64  -> 128 (lane aligned)
H2_PAD = 128                   # 32  -> 128
OUT_PAD = 128                  # 10  -> 128
OUT_REAL = 10


def mlp_kernel(x_ref, w1_ref, b1_ref, w2_ref, b2_ref, w3_ref, b3_ref, o_ref):
    # x_ref: (TB, 784) f32 streamed from HBM; cast to bf16 in-kernel for the MXU.
    # w1: (784, 128) bf16   w2/w3: (128, 128) bf16   biases: (1, 128) f32.
    x = x_ref[...].astype(jnp.bfloat16)

    h1 = jnp.dot(x, w1_ref[...], preferred_element_type=jnp.float32) + b1_ref[...]
    h1 = jnp.maximum(h1, 0.0)

    h2 = jnp.dot(h1.astype(jnp.bfloat16), w2_ref[...],
                 preferred_element_type=jnp.float32) + b2_ref[...]
    h2 = jnp.maximum(h2, 0.0)

    logits = jnp.dot(h2.astype(jnp.bfloat16), w3_ref[...],
                     preferred_element_type=jnp.float32) + b3_ref[...]
    # bf16 writeback, full 128-lane unmasked store; wrapper slices the real 10.
    o_ref[...] = logits.astype(jnp.bfloat16)


def _pad_params(params):
    """Zero-pad weights/biases to lane-aligned widths; weights bf16, biases f32."""
    w1, b1, w2, b2, w3, b3 = params
    w1p = jnp.zeros((IN_FEATURES, H1_PAD), jnp.bfloat16).at[:, :64].set(
        w1.astype(jnp.bfloat16))
    b1p = jnp.zeros((1, H1_PAD), jnp.float32).at[:, :64].set(b1)
    w2p = jnp.zeros((H1_PAD, H2_PAD), jnp.bfloat16).at[:64, :32].set(
        w2.astype(jnp.bfloat16))
    b2p = jnp.zeros((1, H2_PAD), jnp.float32).at[:, :32].set(b2)
    w3p = jnp.zeros((H2_PAD, OUT_PAD), jnp.bfloat16).at[:32, :OUT_REAL].set(
        w3.astype(jnp.bfloat16))
    b3p = jnp.zeros((1, OUT_PAD), jnp.float32).at[:, :OUT_REAL].set(b3)
    return w1p, b1p, w2p, b2p, w3p, b3p


def _choose_tb(B, cap):
    """Pick a batch tile that divides B (no pad copy) and yields >=2 tiles when possible."""
    cap = max(8, (cap // 8) * 8)
    if B <= cap:
        # Split into 2 tiles (uses both TensorCores on v7x) when B allows an
        # 8-aligned halving; otherwise a single full-extent tile (legal for any B).
        if B >= 16 and B % 16 == 0:
            return B // 2
        return B
    # B > cap: largest multiple-of-8 divisor of B that fits the cap -> no padding.
    d = cap
    while d >= 8:
        if B % d == 0:
            return d
        d -= 8
    return cap  # rare fallback: last tile padded in the wrapper


def neural_net_forward(x, params, *, tb=2048):
    """x: (B, 1, 28, 28) float32 (NCHW). Returns logits (B, 10) float32."""
    B = x.shape[0]
    x_flat = x.reshape(B, -1)                      # nn.Flatten; free reshape, stays f32

    TB = _choose_tb(B, tb)
    n_tiles = pl.cdiv(B, TB)
    Bp = n_tiles * TB
    if Bp != B:
        # Fallback only (large prime-ish B); normal paths never hit this copy.
        x_flat = jnp.pad(x_flat, ((0, Bp - B), (0, 0)))

    w1p, b1p, w2p, b2p, w3p, b3p = _pad_params(params)

    resident = lambda shape: pl.BlockSpec(shape, lambda i: (0, 0))

    weight_bytes = (IN_FEATURES * H1_PAD + H1_PAD * H2_PAD + H2_PAD * OUT_PAD) * 2 \
        + (H1_PAD + H2_PAD + OUT_PAD) * 4
    cost = pl.CostEstimate(
        flops=2 * Bp * (IN_FEATURES * H1_PAD + H1_PAD * H2_PAD + H2_PAD * OUT_PAD),
        transcendentals=0,
        bytes_accessed=Bp * IN_FEATURES * 4        # f32 x stream
        + weight_bytes                             # resident weights/biases
        + Bp * OUT_PAD * 2,                        # bf16 output
    )

    out_padded = pl.pallas_call(
        mlp_kernel,
        out_shape=jax.ShapeDtypeStruct((Bp, OUT_PAD), jnp.bfloat16),
        grid=(n_tiles,),
        in_specs=[
            pl.BlockSpec((TB, IN_FEATURES), lambda i: (i, 0)),   # streamed x tile (f32)
            resident((IN_FEATURES, H1_PAD)),
            resident((1, H1_PAD)),
            resident((H1_PAD, H2_PAD)),
            resident((1, H2_PAD)),
            resident((H2_PAD, OUT_PAD)),
            resident((1, OUT_PAD)),
        ],
        out_specs=pl.BlockSpec((TB, OUT_PAD), lambda i: (i, 0)),
        compiler_params=pltpu.CompilerParams(
            dimension_semantics=("parallel",),
            vmem_limit_bytes=48 * 1024 * 1024,
        ),
        cost_estimate=cost,
    )(x_flat, w1p, b1p, w2p, b2p, w3p, b3p)

    return out_padded[:B, :OUT_REAL].astype(jnp.float32)


def init_params(key):
    """Deterministic init mimicking torch.nn.Linear default (uniform +/- 1/sqrt(fan_in))."""
    dims = [(IN_FEATURES, 64), (64, 32), (32, OUT_REAL)]
    params = []
    for fan_in, fan_out in dims:
        key, kw, kb = jax.random.split(key, 3)
        bound = 1.0 / jnp.sqrt(fan_in)
        w = jax.random.uniform(kw, (fan_in, fan_out), jnp.float32, -bound, bound)
        b = jax.random.uniform(kb, (1, fan_out), jnp.float32, -bound, bound)
        params += [w, b]
    return tuple(params)


if __name__ == "__main__":
    key = jax.random.PRNGKey(0)
    k_x, k_p = jax.random.split(key)

    # Small MNIST-shaped batch, NCHW like PyTorch. B=32 -> TB=16, 2 grid tiles.
    B = 32
    x = jax.random.normal(k_x, (B, 1, 28, 28), dtype=jnp.float32)
    params = init_params(k_p)

    logits = neural_net_forward(x, params)
    logits = jax.block_until_ready(logits)
    assert logits.shape == (B, OUT_REAL)

    # Reference of the same math with matching bf16 quantization of matmul
    # inputs and bf16 output storage (kernel accumulates/elementwise in f32).
    w1, b1, w2, b2, w3, b3 = params
    q = lambda a: a.astype(jnp.bfloat16).astype(jnp.float32)
    xf = q(x.reshape(B, -1))
    h1 = jnp.maximum(xf @ q(w1) + b1, 0.0)
    h2 = jnp.maximum(q(h1) @ q(w2) + b2, 0.0)
    ref = (q(h2) @ q(w3) + b3).astype(jnp.bfloat16).astype(jnp.float32)
    assert jnp.allclose(logits, ref, atol=2e-2, rtol=2e-2), (
        float(jnp.max(jnp.abs(logits - ref))))

    print("KERNEL_OK")
</pallas_src>

<mosaic_0001>
module attributes {stable_mosaic.version = 11 : i64} {
  func.func @mlp_kernel(%arg0: i32, %arg1: memref<16x784xf32, #tpu.memory_space<vmem>>, %arg2: memref<784x128xbf16, #tpu.memory_space<vmem>>, %arg3: memref<1x128xf32, #tpu.memory_space<vmem>>, %arg4: memref<128x128xbf16, #tpu.memory_space<vmem>>, %arg5: memref<1x128xf32, #tpu.memory_space<vmem>>, %arg6: memref<128x128xbf16, #tpu.memory_space<vmem>>, %arg7: memref<1x128xf32, #tpu.memory_space<vmem>>, %arg8: memref<16x128xbf16, #tpu.memory_space<vmem>>) attributes {dimension_semantics = [#tpu.dimension_semantics<parallel>], iteration_bounds = array<i64: 2>, scalar_prefetch = 0 : i64, scratch_operands = 0 : i64, tpu.core_type = #tpu.core_type<tc>, window_params = [{transform_indices = @transform_0, window_bounds = array<i64: 16, 784>}, {pipeline_mode = #tpu.pipeline_mode<synchronous>, transform_indices = @transform_1, window_bounds = array<i64: 784, 128>}, {pipeline_mode = #tpu.pipeline_mode<synchronous>, transform_indices = @transform_2, window_bounds = array<i64: 1, 128>}, {pipeline_mode = #tpu.pipeline_mode<synchronous>, transform_indices = @transform_3, window_bounds = array<i64: 128, 128>}, {pipeline_mode = #tpu.pipeline_mode<synchronous>, transform_indices = @transform_4, window_bounds = array<i64: 1, 128>}, {pipeline_mode = #tpu.pipeline_mode<synchronous>, transform_indices = @transform_5, window_bounds = array<i64: 128, 128>}, {pipeline_mode = #tpu.pipeline_mode<synchronous>, transform_indices = @transform_6, window_bounds = array<i64: 1, 128>}, {transform_indices = @transform_7, window_bounds = array<i64: 16, 128>}]} {
    %c0 = arith.constant 0 : index
    %c0_0 = arith.constant 0 : index
    %0 = vector.load %arg1[%c0, %c0_0] : memref<16x784xf32, #tpu.memory_space<vmem>>, vector<16x784xf32>
    %1 = arith.truncf %0 : vector<16x784xf32> to vector<16x784xbf16>
    %c0_1 = arith.constant 0 : index
    %c0_2 = arith.constant 0 : index
    %2 = vector.load %arg2[%c0_1, %c0_2] : memref<784x128xbf16, #tpu.memory_space<vmem>>, vector<784x128xbf16>
    %cst = arith.constant dense<0.000000e+00> : vector<16x128xf32>
    %3 = tpu.matmul %1, %2, %cst {dimension_numbers = #tpu.dot_dimension_numbers<[1], [0], [0], [1], [0, 0, 1, 1], [], []>} : vector<16x784xbf16>, vector<784x128xbf16>, vector<16x128xf32> -> vector<16x128xf32>
    %c0_3 = arith.constant 0 : index
    %c0_4 = arith.constant 0 : index
    %4 = vector.load %arg3[%c0_3, %c0_4] : memref<1x128xf32, #tpu.memory_space<vmem>>, vector<1x128xf32>
    %5 = vector.broadcast %4 : vector<1x128xf32> to vector<16x128xf32>
    %6 = arith.addf %3, %5 : vector<16x128xf32>
    %cst_5 = arith.constant 0.000000e+00 : f32
    %7 = vector.broadcast %cst_5 : f32 to vector<16x128xf32>
    %8 = arith.maximumf %6, %7 : vector<16x128xf32>
    %9 = arith.truncf %8 : vector<16x128xf32> to vector<16x128xbf16>
    %c0_6 = arith.constant 0 : index
    %c0_7 = arith.constant 0 : index
    %10 = vector.load %arg4[%c0_6, %c0_7] : memref<128x128xbf16, #tpu.memory_space<vmem>>, vector<128x128xbf16>
    %cst_8 = arith.constant dense<0.000000e+00> : vector<16x128xf32>
    %11 = tpu.matmul %9, %10, %cst_8 {dimension_numbers = #tpu.dot_dimension_numbers<[1], [0], [0], [1], [0, 0, 1, 1], [], []>} : vector<16x128xbf16>, vector<128x128xbf16>, vector<16x128xf32> -> vector<16x128xf32>
    %c0_9 = arith.constant 0 : index
    %c0_10 = arith.constant 0 : index
    %12 = vector.load %arg5[%c0_9, %c0_10] : memref<1x128xf32, #tpu.memory_space<vmem>>, vector<1x128xf32>
    %13 = vector.broadcast %12 : vector<1x128xf32> to vector<16x128xf32>
    %14 = arith.addf %11, %13 : vector<16x128xf32>
    %cst_11 = arith.constant 0.000000e+00 : f32
    %15 = vector.broadcast %cst_11 : f32 to vector<16x128xf32>
    %16 = arith.maximumf %14, %15 : vector<16x128xf32>
    %17 = arith.truncf %16 : vector<16x128xf32> to vector<16x128xbf16>
    %c0_12 = arith.constant 0 : index
    %c0_13 = arith.constant 0 : index
    %18 = vector.load %arg6[%c0_12, %c0_13] : memref<128x128xbf16, #tpu.memory_space<vmem>>, vector<128x128xbf16>
    %cst_14 = arith.constant dense<0.000000e+00> : vector<16x128xf32>
    %19 = tpu.matmul %17, %18, %cst_14 {dimension_numbers = #tpu.dot_dimension_numbers<[1], [0], [0], [1], [0, 0, 1, 1], [], []>} : vector<16x128xbf16>, vector<128x128xbf16>, vector<16x128xf32> -> vector<16x128xf32>
    %c0_15 = arith.constant 0 : index
    %c0_16 = arith.constant 0 : index
    %20 = vector.load %arg7[%c0_15, %c0_16] : memref<1x128xf32, #tpu.memory_space<vmem>>, vector<1x128xf32>
    %21 = vector.broadcast %20 : vector<1x128xf32> to vector<16x128xf32>
    %22 = arith.addf %19, %21 : vector<16x128xf32>
    %23 = arith.truncf %22 : vector<16x128xf32> to vector<16x128xbf16>
    %c0_17 = arith.constant 0 : index
    %c0_18 = arith.constant 0 : index
    %24 = vector.load %arg8[%c0_17, %c0_18] : memref<16x128xbf16, #tpu.memory_space<vmem>>, vector<16x128xbf16>
    tpu.vector_store %arg8[%c0_17, %c0_18], %23 {strides = array<i32>} : memref<16x128xbf16, #tpu.memory_space<vmem>>, vector<16x128xbf16>,
    return
  }
  func.func @transform_0(%arg0: i32) -> (i32, i32) {
    %c0_i32 = arith.constant 0 : i32
    %c0_i32_0 = arith.constant 0 : i32
    return %arg0, %c0_i32 : i32, i32
  }
  func.func @transform_1(%arg0: i32) -> (i32, i32) {
    %c0_i32 = arith.constant 0 : i32
    %c0_i32_0 = arith.constant 0 : i32
    %c0_i32_1 = arith.constant 0 : i32
    return %c0_i32, %c0_i32_0 : i32, i32
  }
  func.func @transform_2(%arg0: i32) -> (i32, i32) {
    %c0_i32 = arith.constant 0 : i32
    %c0_i32_0 = arith.constant 0 : i32
    %c0_i32_1 = arith.constant 0 : i32
    return %c0_i32, %c0_i32_0 : i32, i32
  }
  func.func @transform_3(%arg0: i32) -> (i32, i32) {
    %c0_i32 = arith.constant 0 : i32
    %c0_i32_0 = arith.constant 0 : i32
    %c0_i32_1 = arith.constant 0 : i32
    return %c0_i32, %c0_i32_0 : i32, i32
  }
  func.func @transform_4(%arg0: i32) -> (i32, i32) {
    %c0_i32 = arith.constant 0 : i32
    %c0_i32_0 = arith.constant 0 : i32
    %c0_i32_1 = arith.constant 0 : i32
    return %c0_i32, %c0_i32_0 : i32, i32
  }
  func.func @transform_5(%arg0: i32) -> (i32, i32) {
    %c0_i32 = arith.constant 0 : i32
    %c0_i32_0 = arith.constant 0 : i32
    %c0_i32_1 = arith.constant 0 : i32
    return %c0_i32, %c0_i32_0 : i32, i32
  }
  func.func @transform_6(%arg0: i32) -> (i32, i32) {
    %c0_i32 = arith.constant 0 : i32
    %c0_i32_0 = arith.constant 0 : i32
    %c0_i32_1 = arith.constant 0 : i32
    return %c0_i32, %c0_i32_0 : i32, i32
  }
  func.func @transform_7(%arg0: i32) -> (i32, i32) {
    %c0_i32 = arith.constant 0 : i32
    %c0_i32_0 = arith.constant 0 : i32
    return %arg0, %c0_i32 : i32, i32
  }
}

</mosaic_0001>

<bundles_post_ra>
// kernel: tpu_custom_call.1
= control target key start
LH: loop header
LB: loop body
LE: loop exit
PB: predicated region body
PF: predicated region fallthrough
CT: control target
= control target key end

     0   :  { %s2154_s0 = inlined_call_operand.hbm [shape: f32[32,784], index: 0, kind: input, shape index: {}]   ;;  %s2155_s1 = inlined_call_operand.hbm [shape: bf16[784,128], index: 1, kind: input, shape index: {}]   ;;  %s2156_s2 = inlined_call_operand.vmem [shape: f32[1,128], index: 2, kind: input, shape index: {}]   ;;  %s2157_s3 = inlined_call_operand.hbm [shape: bf16[128,128], index: 3, kind: input, shape index: {}]   ;;  %s2158_s4 = inlined_call_operand.vmem [shape: f32[1,128], index: 4, kind: input, shape index: {}]   ;;  %s2159_s5 = inlined_call_operand.hbm [shape: bf16[128,128], index: 5, kind: input, shape index: {}]   ;;  %s2160_s6 = inlined_call_operand.vmem [shape: f32[1,128], index: 6, kind: input, shape index: {}]   ;;  %s2161_s7 = inlined_call_operand.hbm [shape: bf16[32,128], index: 7, kind: output, shape index: {}]  }
   0x1   :  { %2166 = sst [smem:[#allocation15_spill]] %s2155_s1 }
   0x2   :  { %12 = vsyncpa [#allocation3], 0 }
   0x3   :  { %14 = vsyncpa [#allocation3 + $0x1], 0 }
   0x4   :  { %15 = vsyncpa [#allocation6], 0 }
   0x5   :  { %16 = vsyncpa [#allocation9], 0 }
   0x6   :  { %17 = vsyncpa [#allocation4], 0 }
   0x7   :  { %19 = vsyncpa [#allocation4 + $0x1], 0  ;;  %s1905_s24 = smov 0   ;;  %s1907_s25 = smov 0  }
   0x8   :  { %s1909_s26 = smov 0   ;;  %s1911_s27 = smov 0  }
   0x9 LB: > { %s1926_s28 = sadd.s32 4294967295, %s1850_s27   ;;  %s1289_s29 = sadd.s32 4294967294, %s1850_s27   ;;  %s1850_s27 = sphi %s1911_s27, %s2187_s27   ;;  %s1846_s26 = sphi %s1909_s26, %s2186_s26   ;;  %s1842_s25 = sphi %s1907_s25, %s2185_s25   ;;  %s1838_s24 = sphi %s1905_s24, %s2184_s24  }
   0xa   : > { %p45_p0 = scmp.ne.s32.totalorder %s1842_s25, %s1838_s24  ;;  %p2162_p1 = scmp.eq.s32.totalorder %s1926_s28, 0 }
   0xb   : > { %p201_p3 = scmp.eq.s32.totalorder %s1289_s29, 1  ;;  %p1290_p5 = scmp.ge.s32.totalorder %s1850_s27, 1 }
   0xc   : > { %p1935_p4 = por %p2162_p1, %p45_p0  ;;  %p208_p7 = scmp.lt.s32.totalorder %s1850_s27, 3 }
   0xd   : > { %p1940_p6 = por %p201_p3, %p45_p0  ;;  %s1852_s10 = smov [#allocation5]  }
   0xe   : > { %s2167_s30 = scalar_select %p1935_p4, 1, 0 }
   0xf   : > { %s2168_s8 = scalar_select %p1940_p6, 1, 0 }
  0x10   : > { %p1945_p8 = pnand %p1290_p5, %p208_p7  ;;  %s220_s11 = sshll.u32 %s1852_s10, 4  ;;  %s221_s11 = int_to_ptr.vmem [resolvable:$true] %s220_s11 }
  0x11   : > { %s1853_s13 = smov [#allocation7]   ;;  %s1854_s15 = smov [#allocation8]  }
  0x12   : > { %s2169_s9 = scalar_select %p1945_p8, 1, 0 }
  0x13   : > { %p1538_p9 = pneg %p1945_p8  ;;  %s236_s14 = sshll.u32 %s1853_s13, 4  ;;  %s237_s14 = int_to_ptr.vmem [resolvable:$true] %s236_s14 }
  0x14   : > { %s252_s16 = sshll.u32 %s1854_s15, 4  ;;  %s1683_s17 = scalar_lea.vmem %s221_s11, 6272  ;;  %s253_s16 = int_to_ptr.vmem [resolvable:$true] %s252_s16 }
  0x15   : > { %p1954_p11 = pnand %p1538_p9, %p2162_p1  ;;  %p1684_p13 = scmp.ne.s32.totalorder %s221_s11, %s1683_s17 }
  0x16   : > { %p1691_p5 = scmp.lt.s32.totalorder %s221_s11, %s221_s11  ;;  %p1692_p7 = scmp.lt.s32.totalorder %s1683_s17, %s1683_s17 }
  0x17   : > { %p1674_p12 = pneg %p1954_p11 }
  0x18   : > { %p1693_p9 = por %p1692_p7, %p1691_p5 }
  0x19   : > { %p1686_p0 = pnand %p1684_p13, %p1674_p12 }
  0x1b   : > { %p1687_p3 = pneg %p1686_p0 }
  0x1d   : > { %p1694_p10 = pnand %p1693_p9, %p1687_p3 }
  0x1f   : > { %1697 = shalt.err (!%p1694_p10)
}
  0x20   : > { %s1855_s18 = smov 64   ;;  %s1856_s19 = smov 4  }
  0x21   : > { %s2171_s1 = sld [smem:[#allocation15_spill]]  ;;  %s1709_s22 = scalar_lea.vmem %s237_s14, 1024 }
  0x22   : > { %p1710_p1 = scmp.ne.s32.totalorder %s237_s14, %s1709_s22  ;;  %p1717_p2 = scmp.lt.s32.totalorder %s237_s14, %s237_s14 }
  0x23   : > { %p1718_p6 = scmp.lt.s32.totalorder %s1709_s22, %s1709_s22 }
  0x24   : > { %p1712_p13 = pnand %p1710_p1, %p1674_p12 }
  0x25   : > { %p1719_p5 = por %p1718_p6, %p1717_p2 }
  0x26   : > { %p1713_p0 = pneg %p1712_p13 }
  0x27   : > { %1541 = dma.hbm_to_vmem [thread:$0]  (!%p1954_p11), %s2171_s1, 6272, %s221_s11, [#allocation6], %s1855_s18, %s1855_s18, %s1856_s19  }
  0x28   : > { %p1720_p3 = pnand %p1719_p5, %p1713_p0 }
  0x2a   : > { %1723 = shalt.err (!%p1720_p3)
}
  0x2b   : > { %1544 = dma.hbm_to_vmem [thread:$0]  (!%p1954_p11), %s2157_s3, 1024, %s237_s14, [#allocation6], %s1855_s18, %s1855_s18, %s1856_s19  }
  0x2c   : > { %s1735_s10 = scalar_lea.vmem %s253_s16, 1024  ;;  %p1743_p9 = scmp.lt.s32.totalorder %s253_s16, %s253_s16 }
  0x2d   : > { %p1736_p10 = scmp.ne.s32.totalorder %s253_s16, %s1735_s10  ;;  %p1744_p13 = scmp.lt.s32.totalorder %s1735_s10, %s1735_s10 }
  0x2f   : > { %p1738_p7 = pnand %p1736_p10, %p1674_p12  ;;  %p1745_p4 = por %p1744_p13, %p1743_p9 }
  0x31   : > { %p1739_p1 = pneg %p1738_p7 }
  0x33   : > { %p1746_p2 = pnand %p1745_p4, %p1739_p1 }
  0x35   : > { %1749 = shalt.err (!%p1746_p2)
}
  0x36   : > { %1547 = dma.hbm_to_vmem [thread:$0]  (!%p1954_p11), %s2159_s5, 1024, %s253_s16, [#allocation9], %s1855_s18, %s1855_s18, %s1856_s19  }
  0x37   : > { %s1985_s14 = sadd.s32 1, %s1850_s27   ;;  %s32_s12 = sadd.s32 1, %s1846_s26 }
  0x38   : > { %s29_s15 = ssub.s32 %s1850_s27, %s1985_s14  ;;  %p39_p6 = scmp.ne.s32.totalorder %s1846_s26, %s1842_s25 }
  0x39   : > { %p30_p4 = scmp.eq.s32.totalorder %s29_s15, 0  ;;  %p40_p12 = scmp.eq.s32.totalorder %s1850_s27, 0 }
  0x3a   : > { %p1559_p0 = scmp.lt.s32.totalorder %s1850_s27, 2  ;;  %p2172_p3 = scmp.eq.s32.totalorder %s1926_s28, 1 }
  0x3b   : > { %s1995_s17 = scalar_select %p30_p4, %s1846_s26, %s32_s12  }
  0x3c   : > { %p41_p5 = por %p40_p12, %p39_p6  ;;  %p1999_p10 = por %p2172_p3, %p39_p6 }
  0x3d   : > { %s269_s21 = sand.u32 1, %s1846_s26   ;;  %s1520_s22 = smul.u32 1792, %s1850_s27 }
  0x3e   : > { %s2173_s20 = scalar_select %p1999_p10, 1, 0 }
  0x3f   : > { %s1519_s16 = smul.u32 112, %s269_s21  ;;  %s2008_s23 = scalar_lea.hbm %s2154_s0, %s1520_s22 }
  0x40   : > { %p2010_p11 = pnand %p1559_p0, %p41_p5  ;;  %s2016_s13 = scalar_lea.sflag [#allocation3], %s269_s21 }
  0x41   : > { %s273_s10 = scalar_lea.vmem [#allocation2], %s1519_s16  ;;  %s1750_s15 = scalar_lea.hbm %s2008_s23, 1792 }
  0x42   : > { %s281_s11 = sshll.u32 %s273_s10, 4  ;;  %p1751_p7 = scmp.ne.s32.totalorder %s2008_s23, %s1750_s15  ;;  %s2014_s11 = int_to_ptr.vmem [resolvable:$true] %s281_s11 }
  0x43   : > { %p1752_p1 = pneg %p2010_p11  ;;  %s1755_s18 = scalar_lea.hbm %s2154_s0, 3584 }
  0x44   : > { %p1756_p2 = scmp.lt.s32.totalorder %s2008_s23, %s2154_s0  ;;  %p1757_p4 = scmp.lt.s32.totalorder %s1755_s18, %s1750_s15 }
  0x45   : > { %p1753_p9 = pnand %p1752_p1, %p1751_p7 }
  0x46   : > { %p1758_p6 = por %p1757_p4, %p1756_p2 }
  0x47   : > { %p1754_p13 = pneg %p1753_p9 }
  0x49   : > { %p1759_p12 = pnand %p1758_p6, %p1754_p13 }
  0x4b   : > { %1762 = shalt.err (!%p1759_p12)
}
  0x4c   : > { %s1763_s21 = scalar_lea.vmem %s2014_s11, 1792  ;;  %s1857_s16 = smov [#allocation2]  }
  0x4d   : > { %p1764_p0 = scmp.ne.s32.totalorder %s2014_s11, %s1763_s21  ;;  %s1768_s10 = sshll.u32 %s1857_s16, 4  ;;  %s1769_s10 = int_to_ptr.vmem [resolvable:$false] %s1768_s10 }
  0x4e   : > { %s1770_s12 = scalar_lea.vmem %s1769_s10, 3584  ;;  %p1771_p7 = scmp.lt.s32.totalorder %s2014_s11, %s1769_s10 }
  0x4f   : > { %p1766_p5 = pnand %p1764_p0, %p1752_p1  ;;  %p1772_p9 = scmp.lt.s32.totalorder %s1770_s12, %s1763_s21 }
  0x51   : > { %p1767_p3 = pneg %p1766_p5  ;;  %p1773_p10 = por %p1772_p9, %p1771_p7 }
  0x53   : > { %p1774_p8 = pnand %p1773_p10, %p1767_p3 }
  0x55   : > { %1777 = shalt.err (!%p1774_p8)
}
  0x56   : > { %s1858_s1 = smov 896   ;;  %s1859_s15 = smov 56  }
  0x57   : > { %1551 = dma.hbm_to_vmem [thread:$0]  (!%p2010_p11), %s2008_s23, 1792, %s2014_s11, %s2016_s13, %s1858_s1, %s1858_s1, %s1859_s15  }
  0x58   : > { %p2175_p1 = scmp.ne.s32.totalorder %s2169_s9, 0 }
  0x59   : > { %s2040_s22 = sand.u32 (!%p2175_p1), 1, %s1842_s25   ;;  %p2176_p8 = scmp.ne.s32.totalorder (!%p2175_p1), %s2167_s30, 0 }
  0x5a   : > { %293 = sbr.rel (%p2175_p1) target bundleno = 794 (0x31a), region = 48  ;;  %s296_s19 = scalar_lea.sflag (!%p2175_p1), [#allocation3], %s2040_s22 }
  0x5b   : > { %s1521_s18 = smul.u32 (!%p2175_p1), 112, %s2040_s22 }
  0x5d   : > { %s2044_s21 = scalar_lea.vmem (!%p2175_p1), [#allocation2], %s1521_s18 }
  0x5f   : > { %1821 = dma.done.wait (%p2176_p8), %s296_s19, 1792  }
  0x60   : > { %1823 = vsyncadd (%p2176_p8), %s296_s19, 4294965504  ;;  %p2177_p10 = scmp.eq.s32.totalorder %s1926_s28, 0 }
  0x62   : > { %1825 = dma.done.wait (%p2177_p10), [#allocation6], 7296   ;;  %p2178_p11 = pmov %p2177_p10 }
  0x63   : > { %p2179_p13 = pmov %p2177_p10 }
  0x64   : > { %1827 = vsyncadd (%p2178_p11), [#allocation6], 4294960000 }
  0x65   : > { %1829 = dma.done.wait (%p2179_p13), [#allocation9], 1024   ;;  %p2180_p2 = pmov %p2177_p10 }
  0x66   : > { %v1607_v0 = vld [vmem:[#allocation5 + $0x78] sm:$0xff]   ;;  %v1611_v4 = vld [vmem:[#allocation5 + $0x70] sm:$0xff]   ;;  %v1615_v8 = vld [vmem:[#allocation5 + $0x68] sm:$0xff]   ;;  %v1860_v43 = vmov 0.0   ;;  %vm1861_vm0 = vmmov 0   ;;  %vm765_vm1 = vcmask 130048  }
  0x67   : > { %1831 = vsyncadd (%p2180_p2), [#allocation9], 4294966272  ;;  %v1608_v1 = vld [vmem:[#allocation5 + $0x38] sm:$0xff]   ;;  %1387 = vmatprep.subr.bf16.mxu0 %v1607_v0  ;;  %v1612_v5 = vld [vmem:[#allocation5 + $0x30] sm:$0xff]   ;;  %s1302_s11 = sshll.u32 %s2040_s22, 3  ;;  %s1381_s1 = sshll.u32 %s1926_s28, 7 }
  0x68   : > { %v1609_v2 = vld [vmem:[#allocation5 + $0xf8] sm:$0xff]   ;;  %1388 = vmatpush3.bf16.msra.mxu0 %v1608_v1  ;;  %v1613_v6 = vld [vmem:[#allocation5 + $0xf0] sm:$0xff]   ;;  %v1616_v9 = vld [vmem:[#allocation5 + $0x28] sm:$0xff]   ;;  %s341_s10 = scalar_lea.vmem [#allocation10], %s1302_s11  ;;  %s2111_s19 = scalar_lea.hbm %s2161_s7, %s1381_s1 }
  0x69   : > { %v1610_v3 = vld [vmem:[#allocation5 + $0xb8] sm:$0xff]   ;;  %1409 = vmatprep.subr.bf16.mxu1 %v1609_v2  ;;  %1389 = vmatprep.subr.bf16.mxu0 %v1611_v4  ;;  %v1614_v7 = vld [vmem:[#allocation5 + $0xb0] sm:$0xff]   ;;  %v1617_v10 = vld [vmem:[#allocation5 + $0xe8] sm:$0xff]   ;;  %s1187_s12 = sshll.u32 %s341_s10, 4  ;;  %p2181_p6 = scmp.ne.s32.totalorder %s2173_s20, 0  ;;  %s2106_s12 = int_to_ptr.vmem [resolvable:$true] %s1187_s12 }
  0x6a   : > { %1410 = vmatpush3.bf16.msra.mxu1 %v1610_v3  ;;  %v1618_v11 = vld [vmem:[#allocation5 + $0xa8] sm:$0xff]   ;;  %v1619_v12 = vld [vmem:[#allocation5 + $0x60] sm:$0xff]   ;;  %v1623_v16 = vld [vmem:[#allocation5 + $0x58] sm:$0xff]   ;;  %s1778_s30 = scalar_lea.vmem %s2106_s12, 128  ;;  %s1862_s28 = smov [#allocation10]  }
  0x6b   : > { %1411 = vmatprep.subr.bf16.mxu1 %v1613_v6  ;;  %v1620_v13 = vld [vmem:[#allocation5 + $0x20] sm:$0xff]   ;;  %v1624_v17 = vld [vmem:[#allocation5 + $0x18] sm:$0xff]   ;;  %v1627_v20 = vld [vmem:[#allocation5 + $0x50] sm:$0xff]   ;;  %p1779_p4 = scmp.ne.s32.totalorder %s2106_s12, %s1778_s30  ;;  %s1782_s9 = sshll.u32 %s1862_s28, 4  ;;  %s1783_s9 = int_to_ptr.vmem [resolvable:$false] %s1782_s9 }
  0x6c   : > { %1390 = vmatpush3.bf16.msra.mxu0 %v1612_v5  ;;  %v1621_v14 = vld [vmem:[#allocation5 + $0xe0] sm:$0xff]   ;;  %v1625_v18 = vld [vmem:[#allocation5 + $0xd8] sm:$0xff]   ;;  %v1628_v21 = vld [vmem:[#allocation5 + $0x10] sm:$0xff]   ;;  %s1784_s23 = scalar_lea.vmem %s1783_s9, 256  ;;  %p1785_p5 = scmp.lt.s32.totalorder %s2106_s12, %s1783_s9 }
  0x6d   : > { %1391 = vmatprep.subr.bf16.mxu0 %v1615_v8  ;;  %v1622_v15 = vld [vmem:[#allocation5 + $0xa0] sm:$0xff]   ;;  %v1626_v19 = vld [vmem:[#allocation5 + $0x98] sm:$0xff]   ;;  %v1629_v22 = vld [vmem:[#allocation5 + $0xd0] sm:$0xff]   ;;  %p1780_p12 = pnand %p1779_p4, %p2181_p6  ;;  %p1786_p3 = scmp.lt.s32.totalorder %s1784_s23, %s1778_s30 }
  0x6e   : > { %1412 = vmatpush3.bf16.msra.mxu1 %v1614_v7  ;;  %v1630_v23 = vld [vmem:[#allocation5 + $0x90] sm:$0xff]   ;;  %v1631_v24 = vld [vmem:[#allocation5 + $0x48] sm:$0xff]   ;;  %v1635_v28 = vld [vmem:[#allocation5 + $0x40] sm:$0xff]  }
  0x6f   : > { %1413 = vmatprep.subr.bf16.mxu1 %v1617_v10  ;;  %v1632_v25 = vld [vmem:[#allocation5 + $0x8] sm:$0xff]   ;;  %v1636_v29 = vld [vmem:[#allocation5] sm:$0xff]   ;;  %v1639_v38 = vld [vmem:[#allocation5 + $0x178] sm:$0xff]   ;;  %p1781_p0 = pneg %p1780_p12  ;;  %p1787_p7 = por %p1786_p3, %p1785_p5 }
  0x70   : > { %1392 = vmatpush3.bf16.msra.mxu0 %v1616_v9  ;;  %v1633_v26 = vld [vmem:[#allocation5 + $0xc8] sm:$0xff]   ;;  %v1637_v30 = vld [vmem:[#allocation5 + $0xc0] sm:$0xff]   ;;  %v1640_v42 = vld [vmem:[#allocation5 + $0x138] sm:$0xff]  }
  0x71   : > { %1393 = vmatprep.subr.bf16.mxu0 %v1619_v12  ;;  %v1634_v27 = vld [vmem:[#allocation5 + $0x88] sm:$0xff]   ;;  %v353_v32 = vld [vmem:[%s2044_s21 + $0x40] sm:$0xff]  ;;  %v355_v40 = vld [vmem:[%s2044_s21 + $0x50] sm:$0xff]  ;;  %p1788_p9 = pnand %p1787_p7, %p1781_p0 }
  0x72   : > { %1414 = vmatpush3.bf16.msra.mxu1 %v1618_v11  ;;  %v346_v31 = vld [vmem:[%s2044_s21 + $0x8] sm:$0xff]  ;;  %v1638_v34 = vld [vmem:[#allocation5 + $0x80] sm:$0xff]   ;;  %v352_v36 = vld [vmem:[%s2044_s21 + $0x38] sm:$0xff] }
  0x73   : > { %1415 = vmatprep.subr.bf16.mxu1 %v1621_v14  ;;  %v360_v33 = vpack.c.bf16 %v353_v32, %v346_v31  ;;  %v345_v35 = vld [vmem:[%s2044_s21] sm:$0xff]  ;;  %v348_v39 = vld [vmem:[%s2044_s21 + $0x18] sm:$0xff]  ;;  %v347_v44 = vld [vmem:[%s2044_s21 + $0x10] sm:$0xff] }
  0x74   : > { %1394 = vmatpush3.bf16.msra.mxu0 %v1620_v13  ;;  %v359_v37 = vpack.c.bf16 %v352_v36, %v345_v35  ;;  %v362_v41 = vpack.c.bf16 %v355_v40, %v348_v39  ;;  %v354_v45 = vld [vmem:[%s2044_s21 + $0x48] sm:$0xff]  ;;  %v1641_v47 = vld [vmem:[#allocation5 + $0x170] sm:$0xff]   ;;  %v1645_v51 = vld [vmem:[#allocation5 + $0x160] sm:$0xff]  }
  0x75   : > { %1395 = vmatprep.subr.bf16.mxu0 %v1623_v16  ;;  %801 = vmatprep.mubr.bf16.mxu0 %v360_v33  ;;  %v361_v46 = vpack.c.bf16 %v354_v45, %v347_v44  ;;  %v1642_v48 = vld [vmem:[#allocation5 + $0x130] sm:$0xff]   ;;  %v1643_v49 = vld [vmem:[#allocation5 + $0x168] sm:$0xff]   ;;  %v1646_v52 = vld [vmem:[#allocation5 + $0x120] sm:$0xff]  }
  0x76   : > { %1416 = vmatpush3.bf16.msra.mxu1 %v1622_v15  ;;  %842 = vmatprep.mubr.bf16.mxu1 %v362_v41  ;;  %v1644_v50 = vld [vmem:[#allocation5 + $0x128] sm:$0xff]   ;;  %v1647_v53 = vld [vmem:[#allocation5 + $0x158] sm:$0xff]   ;;  %v1649_v55 = vld [vmem:[#allocation5 + $0x150] sm:$0xff]  }
  0x77   : > { %1417 = vmatprep.subr.bf16.mxu1 %v1625_v18  ;;  %v1648_v54 = vld [vmem:[#allocation5 + $0x118] sm:$0xff]   ;;  %v1655_v56 = vld [vmem:[#allocation5 + $0x180] sm:$0xff]   ;;  %v1650_v58 = vld [vmem:[#allocation5 + $0x110] sm:$0xff]  }
  0x78   : > { %1396 = vmatpush3.bf16.msra.mxu0 %v1624_v17  ;;  %v350_v57 = vld [vmem:[%s2044_s21 + $0x28] sm:$0xff]  ;;  %v357_v60 = vld [vmem:[%s2044_s21 + $0x60] sm:$0xff]  ;;  %v351_v62 = vld [vmem:[%s2044_s21 + $0x30] sm:$0xff] }
  0x79   : > { %1397 = vmatprep.subr.bf16.mxu0 %v1627_v20  ;;  %v1651_v59 = vld [vmem:[#allocation5 + $0x148] sm:$0xff]   ;;  %v364_v61 = vpack.c.bf16 %v357_v60, %v350_v57  ;;  %v1653_v2 = vld [vmem:[#allocation5 + $0x140] sm:$0xff]   ;;  %v1657_v8 = vld [vmem:[#allocation7 + $0x30] sm:$0xff]  }
  0x7a   : > { %1418 = vmatpush3.bf16.msra.mxu1 %v1626_v19  ;;  %v358_v63 = vld [vmem:[%s2044_s21 + $0x68] sm:$0xff]  ;;  %v1654_v3 = vld [vmem:[#allocation5 + $0x100] sm:$0xff]   ;;  %v356_v5 = vld [vmem:[%s2044_s21 + $0x58] sm:$0xff] }
  0x7b   : > { %1419 = vmatprep.subr.bf16.mxu1 %v1629_v22  ;;  %v365_v0 = vpack.c.bf16 %v358_v63, %v351_v62  ;;  %v1652_v1 = vld [vmem:[#allocation5 + $0x108] sm:$0xff]   ;;  %v349_v4 = vld [vmem:[%s2044_s21 + $0x20] sm:$0xff]  ;;  %v1661_v12 = vld [vmem:[#allocation7 + $0x10] sm:$0xff]   ;;  %s1174_s21 = scalar_lea.sflag [#allocation4], %s2040_s22 }
  0x7c   : > { %1398 = vmatpush3.bf16.msra.mxu0 %v1628_v21  ;;  %v363_v6 = vpack.c.bf16 %v356_v5, %v349_v4  ;;  %v1656_v7 = vld [vmem:[#allocation7 + $0x38] sm:$0xff]   ;;  %v1658_v9 = vld [vmem:[#allocation7 + $0x28] sm:$0xff]   ;;  %v1659_v10 = vld [vmem:[#allocation7 + $0x20] sm:$0xff]  }
  0x7d   : > { %1399 = vmatprep.subr.bf16.mxu0 %v1631_v24  ;;  %v1660_v11 = vld [vmem:[#allocation7 + $0x18] sm:$0xff]   ;;  %v1662_v13 = vld [vmem:[#allocation7 + $0x8] sm:$0xff]   ;;  %v1663_v14 = vld [vmem:[#allocation7] sm:$0xff]  }
  0x7e   : > { %1420 = vmatpush3.bf16.msra.mxu1 %v1630_v23  ;;  %v1664_v15 = vld [vmem:[#allocation8 + $0x38] sm:$0xff]   ;;  %v1665_v16 = vld [vmem:[#allocation8 + $0x30] sm:$0xff]   ;;  %v1666_v17 = vld [vmem:[#allocation8 + $0x28] sm:$0xff]  }
  0x7f   : > { %1421 = vmatprep.subr.bf16.mxu1 %v1633_v26  ;;  %v1667_v18 = vld [vmem:[#allocation8 + $0x20] sm:$0xff]   ;;  %v1668_v19 = vld [vmem:[#allocation8 + $0x18] sm:$0xff]  }
  0x80   : > { %1400 = vmatpush3.bf16.msra.mxu0 %v1632_v25  ;;  %v1303_v32 = vld [vmem:[%s2156_s2] ss:$0 sm:$0xff]  ;;  %v1671_v57 = vld [vmem:[#allocation8] sm:$0xff]  }
  0x81   : > { %1401 = vmatprep.subr.bf16.mxu0 %v1635_v28  ;;  %v1363_v4 = vld [vmem:[%s2160_s6] ss:$0 sm:$0xff] }
  0x82   : > { %1422 = vmatpush3.bf16.msra.mxu1 %v1634_v27 }
  0x83   : > { %1423 = vmatprep.subr.bf16.mxu1 %v1637_v30 }
  0x84   : > { %1402 = vmatpush3.bf16.msra.mxu0 %v1636_v29 }
  0x85   : > { %1431 = vmatprep.subr.bf16.mxu0 %v1639_v38 }
  0x86   : > { %1424 = vmatpush3.bf16.msra.mxu1 %v1638_v34 }
  0x87   : > { %1473 = vmatprep.subr.bf16.mxu1 %v1860_v43  ;;  %802 = vmatmul.mubr.bf16.vlgmr.msra.gmra.mxu0 %v359_v37 }
  0x88   : > { %1432 = vmatpush3.bf16.msra.mxu0 %v1640_v42  ;;  %883 = vmatprep.mubr.bf16.mxu0 %v364_v61 }
  0x89   : > { %843 = vmatmul.mubr.bf16.vlgmr.msra.gmra.mxu1 %v361_v46  ;;  %1433 = vmatprep.subr.bf16.mxu0 %v1641_v47 }
  0x8a   : > { %1475 = vmatprep.mubr.msk.bf16.mxu1 %vm1861_vm0, %v1860_v43  ;;  %1474 = vmatpush3.bf16.msra.mxu1 %v1655_v56  ;;  %v1670_v56 = vld [vmem:[#allocation8 + $0x8] sm:$0xff]  }
  0x8b   : > { %1479 = vmatprep.subr.bf16.mxu1 %v1860_v43 }
  0x8c   : > { %1434 = vmatpush3.bf16.msra.mxu0 %v1642_v48 }
  0x8d   : > { %1435 = vmatprep.subr.bf16.mxu0 %v1643_v49 }
  0x90   : > { %1436 = vmatpush3.bf16.msra.mxu0 %v1644_v50 }
  0x91   : > { %1437 = vmatprep.subr.bf16.mxu0 %v1645_v51  ;;  %1476 = vmatmul.mubr.msk.bf16.vlgmr.msra.gmra.mxu1 %vm765_vm1, %v365_v0 }
  0x92   : > { %1495 = vmatprep.mubr.msk.bf16.mxu1 %vm1861_vm0, %v1860_v43  ;;  %1480 = vmatpush3.bf16.msra.mxu1 %v1656_v7 }
  0x93   : > { %1481 = vmatprep.subr.bf16.mxu1 %v1860_v43 }
  0x94   : > { %1438 = vmatpush3.bf16.msra.mxu0 %v1646_v52 }
  0x95   : > { %1439 = vmatprep.subr.bf16.mxu0 %v1647_v53 }
  0x96   : > { %1482 = vmatpush3.bf16.msra.mxu1 %v1657_v8 }
  0x97   : > { %1483 = vmatprep.subr.bf16.mxu1 %v1860_v43 }
  0x98   : > { %1440 = vmatpush3.bf16.msra.mxu0 %v1648_v54 }
  0x99   : > { %1441 = vmatprep.subr.bf16.mxu0 %v1649_v55  ;;  %v1669_v55 = vld [vmem:[#allocation8 + $0x10] sm:$0xff]  }
  0x9a   : > { %1484 = vmatpush3.bf16.msra.mxu1 %v1658_v9 }
  0x9b   : > { %1485 = vmatprep.subr.bf16.mxu1 %v1860_v43 }
  0x9c   : > { %1442 = vmatpush3.bf16.msra.mxu0 %v1650_v58  ;;  %v1354_v58 = vld [vmem:[%s2158_s4] ss:$0 sm:$0xff] }
  0x9d   : > { %1443 = vmatprep.subr.bf16.mxu0 %v1651_v59 }
  0x9e   : > { %1486 = vmatpush3.bf16.msra.mxu1 %v1659_v10 }
  0x9f   : > { %1487 = vmatprep.subr.bf16.mxu1 %v1860_v43 }
  0xa0   : > { %1444 = vmatpush3.bf16.msra.mxu0 %v1652_v1 }
  0xa1   : > { %1445 = vmatprep.subr.bf16.mxu0 %v1653_v2 }
  0xa2   : > { %1488 = vmatpush3.bf16.msra.mxu1 %v1660_v11 }
  0xa3   : > { %1489 = vmatprep.subr.bf16.mxu1 %v1860_v43 }
  0xa4   : > { %1446 = vmatpush3.bf16.msra.mxu0 %v1654_v3 }
  0xa5   : > { %1499 = vmatprep.subr.bf16.mxu0 %v1860_v43 }
  0xa6   : > { %1490 = vmatpush3.bf16.msra.mxu1 %v1661_v12 }
  0xa7   : > { %884 = vmatmul.mubr.bf16.vlgmr.msra.gmra.mxu0 %v363_v6  ;;  %1491 = vmatprep.subr.bf16.mxu1 %v1860_v43 }
  0xa8   : > { %1515 = vmatprep.mubr.msk.bf16.mxu0 %vm1861_vm0, %v1860_v43  ;;  %1500 = vmatpush3.bf16.msra.mxu0 %v1664_v15 }
  0xa9   : > { %1501 = vmatprep.subr.bf16.mxu0 %v1860_v43 }
  0xaa   : > { %1492 = vmatpush3.bf16.msra.mxu1 %v1662_v13 }
  0xab   : > { %1493 = vmatprep.subr.bf16.mxu1 %v1860_v43 }
  0xac   : > { %1502 = vmatpush3.bf16.msra.mxu0 %v1665_v16 }
  0xad   : > { %1503 = vmatprep.subr.bf16.mxu0 %v1860_v43 }
  0xae   : > { %1494 = vmatpush3.bf16.msra.mxu1 %v1663_v14 }
  0xb0   : > { %1504 = vmatpush3.bf16.msra.mxu0 %v1666_v17 }
  0xb1   : > { %1505 = vmatprep.subr.bf16.mxu0 %v1860_v43 }
  0xb4   : > { %1506 = vmatpush3.bf16.msra.mxu0 %v1667_v18 }
  0xb5   : > { %1507 = vmatprep.subr.bf16.mxu0 %v1860_v43 }
  0xb8   : > { %1508 = vmatpush3.bf16.msra.mxu0 %v1668_v19 }
  0xb9   : > { %1509 = vmatprep.subr.bf16.mxu0 %v1860_v43 }
  0xbc   : > { %1510 = vmatpush3.bf16.msra.mxu0 %v1669_v55 }
  0xbd   : > { %1511 = vmatprep.subr.bf16.mxu0 %v1860_v43 }
  0xc0   : > { %1512 = vmatpush3.bf16.msra.mxu0 %v1670_v56 }
  0xc1   : > { %1513 = vmatprep.subr.bf16.mxu0 %v1860_v43 }
  0xc4   : > { %1514 = vmatpush3.bf16.msra.mxu0 %v1671_v57 }
 0x147   : > { %v1403_v23 = vpop.f32.mrf.mxu0 }
 0x149   : > { %v1425_v20 = vpop.f32.mrf.mxu1  ;;  %v1404_v25 = vpop.f32.mrf.mxu0 }
 0x14a   : > { %v1405_v31 = vadd.f32 %v1404_v25, %v1403_v23 }
 0x14b   : > { %v1426_v21 = vpop.f32.mrf.mxu1  ;;  %v1406_v28 = vpop.f32.mrf.mxu0 }
 0x14c   : > { %v804_v34 = vadd.f32 %v1405_v31, %v1303_v32  ;;  %v1427_v35 = vadd.f32 %v1426_v21, %v1425_v20 }
 0x14d   : > { %v1428_v22 = vpop.f32.mrf.mxu1  ;;  %v1407_v33 = vpop.f32.mrf.mxu0 }
 0x14e   : > { %v1408_v36 = vadd.f32 %v1407_v33, %v1406_v28  ;;  %v845_v39 = vadd.f32 %v1427_v35, %v804_v34 }
 0x14f   : > { %v1429_v24 = vpop.f32.mrf.mxu1 }
 0x150   : > { %v807_v40 = vadd.f32 %v1408_v36, %v1303_v32  ;;  %v1430_v41 = vadd.f32 %v1429_v24, %v1428_v22 }
 0x151   : > { %v926_v26 = vpop.f32.mrf.mxu1 }
 0x152   : > { %v848_v47 = vadd.f32 %v1430_v41, %v807_v40 }
 0x153   : > { %v1477_v27 = vpop.f32.mrf.mxu1 }
 0x155   : > { %v929_v29 = vpop.f32.mrf.mxu1 }
 0x157   : > { %v1478_v30 = vpop.f32.mrf.mxu1 }
 0x167   : > { %v1447_v37 = vpop.f32.mrf.mxu0 }
 0x169   : > { %v1448_v38 = vpop.f32.mrf.mxu0 }
 0x16a   : > { %v1449_v42 = vadd.f32 %v1448_v38, %v1447_v37 }
 0x16b   : > { %v1450_v44 = vpop.f32.mrf.mxu0 }
 0x16c   : > { %v886_v45 = vadd.f32 %v1449_v42, %v845_v39 }
 0x16d   : > { %v1451_v46 = vpop.f32.mrf.mxu0 }
 0x16e   : > { %v1452_v48 = vadd.f32 %v1451_v46, %v1450_v44  ;;  %v927_v49 = vadd.f32 %v926_v26, %v886_v45 }
 0x170   : > { %v889_v50 = vadd.f32 %v1452_v48, %v848_v47  ;;  %v933_v52 = vmax.f32 %v927_v49, 0.0 }
 0x172   : > { %v930_v51 = vadd.f32 %v929_v29, %v889_v50 }
 0x174   : > { %v934_v53 = vmax.f32 %v930_v51, 0.0 }
 0x176   : > { %v935_v54 = vpack.c.bf16 %v934_v53, %v933_v52 }
 0x178   : > { %1496 = vmatmul.mubr.bf16.vlgmr.msra.gmra.mxu1 %v935_v54 }
 0x238   : > { %v1041_v59 = vpop.f32.mrf.mxu1 }
 0x239   : > { %v1042_v61 = vadd.f32 %v1354_v58, %v1041_v59 }
 0x23a   : > { %v1497_v60 = vpop.f32.mrf.mxu1 }
 0x23b   : > { %v1048_v1 = vmax.f32 %v1042_v61, 0.0 }
 0x23c   : > { %v1044_v62 = vpop.f32.mrf.mxu1 }
 0x23d   : > { %v1045_v63 = vadd.f32 %v1354_v58, %v1044_v62 }
 0x23e   : > { %v1498_v0 = vpop.f32.mrf.mxu1 }
 0x23f   : > { %v1049_v2 = vmax.f32 %v1045_v63, 0.0 }
 0x241   : > { %v1050_v3 = vpack.c.bf16 %v1049_v2, %v1048_v1 }
 0x243   : > { %1516 = vmatmul.mubr.bf16.vlgmr.msra.gmra.mxu0 %v1050_v3 }
 0x303   : > { %v1156_v43 = vpop.f32.mrf.mxu0 }
 0x304   : > { %v1157_v7 = vadd.f32 %v1363_v4, %v1156_v43 }
 0x305   : > { %v1517_v5 = vpop.f32.mrf.mxu0 }
 0x307   : > { %v1159_v6 = vpop.f32.mrf.mxu0 }
 0x308   : > { %v1160_v8 = vadd.f32 %v1363_v4, %v1159_v6 }
 0x309   : > { %v1518_v9 = vpop.f32.mrf.mxu0 }
 0x30a   : > { %v1385_v10 = vpack.c.bf16 %v1160_v8, %v1157_v7 }
 0x30c   : > { %1386 = vst [vmem:[%s341_s10] sm:$0xff] %v1385_v10  }
 0x30d   : > { %1791 = shalt.err (!%p1788_p9)
}
 0x30e   : > { %s1792_s29 = scalar_lea.hbm %s2111_s19, 128  ;;  %s1796_s16 = scalar_lea.hbm %s2161_s7, 256 }
 0x30f   : > { %p1793_p1 = scmp.ne.s32.totalorder %s2111_s19, %s1792_s29  ;;  %p1797_p11 = scmp.lt.s32.totalorder %s2111_s19, %s2161_s7 }
 0x310   : > { %p1798_p13 = scmp.lt.s32.totalorder %s1796_s16, %s1792_s29 }
 0x311   : > { %p1794_p8 = pnand %p1793_p1, %p2181_p6 }
 0x312   : > { %p1799_p2 = por %p1798_p13, %p1797_p11 }
 0x313   : > { %p1795_p10 = pneg %p1794_p8 }
 0x315   : > { %p1800_p4 = pnand %p1799_p2, %p1795_p10 }
 0x317   : > { %1803 = shalt.err (!%p1800_p4)
}
 0x318   : > { %s1863_s15 = smov 64   ;;  %s1864_s18 = smov 4  }
 0x319   : > { %1536 = dma.vmem_to_hbm [thread:$0]  (%p2181_p6), %s2106_s12, 128, %s2111_s19, %s1174_s21, %s1863_s15, %s1863_s15, %s1864_s18  }
 0x31a PF: > { %s1202_s30 = sand.u32 1, %s1838_s24   ;;  %p2182_p12 = scmp.ne.s32.totalorder %s2168_s8, 0 }
 0x31b   : > { %p2183_p0 = scmp.ge.s32.totalorder %s1850_s27, 2  ;;  %s1203_s28 = scalar_lea.sflag [#allocation4], %s1202_s30 }
 0x31d   : > { %p1553_p5 = pnand %p2183_p0, %p2182_p12 }
 0x31f   : > { %p1554_p3 = pneg %p1553_p5 }
 0x321   : > { %1833 = dma.done.wait (%p1554_p3), %s1203_s28, 128  }
 0x322   : > { %1835 = vsyncadd (%p1554_p3), %s1203_s28, 4294967168  ;;  %p22_p7 = scmp.ge.s32.totalorder %s1985_s14, 4   ;;  %s2184_s24 = smov %s1842_s25 }
 0x323   : > { %s2185_s25 = smov %s1846_s26  ;;  %s2186_s26 = smov %s1995_s17 }
 0x324   : > { %s2187_s27 = smov %s1985_s14  ;;  %24 = sbr.rel (!%p22_p7) target bundleno = 9 (0x9), region = 105 }
 0x329   :  { %1208 = vsyncpa [#allocation3], 1 }
 0x32a   :  { %1210 = vsyncpa [#allocation3 + $0x1], 1 }
 0x32b   :  { %1211 = vsyncpa [#allocation6], 1 }
 0x32c   :  { %1212 = vsyncpa [#allocation9], 1 }
 0x32d   :  { %1213 = vsyncpa [#allocation4], 1 }
 0x32e   :  { %1215 = vsyncpa [#allocation4 + $0x1], 1 }

</bundles_post_ra>
